<compile_context>
chip_gen: v6e
topology: v6e:2x2x1
jax: 0.10.0
libtpu: 0.0.40
codegen_flags: <defaults>
</compile_context>

<pallas_src>
import jax
import jax.numpy as jnp
import numpy as np
from jax import lax
from jax.experimental import pallas as pl
from jax.experimental.pallas import tpu as pltpu

NEG_SLOPE = 0.2
NEG_INF = -1e30   # finite in bf16/f32 on purpose (no inf-inf NaNs)
M_INIT = -1e30


def _round_up(v, m):
    return ((v + m - 1) // m) * m


# ---------------------------------------------------------------------------
# Kernel A: fused projection  y = x @ [W_all | wl | wr]
#   ft_aug : (H, FP, N)  per-head transposed projected features; row F is a
#            "ones" row so Kernel B's matmul also accumulates the softmax
#            denominator.  (FP = F + 1 rounded up to a sublane multiple.)
#   el, er : (N, H) f32 attention-logit pieces (src / dst sides).
# ---------------------------------------------------------------------------
def _make_proj_kernel(H, F, FP, HF, mm_dt):
    def kernel(x_ref, w_ref, ftaug_ref, el_ref, er_ref):
        br = x_ref.shape[0]
        y = jnp.dot(x_ref[...], w_ref[...], preferred_element_type=jnp.float32)
        el_ref[...] = y[:, HF:HF + H]
        er_ref[...] = y[:, HF + H:HF + 2 * H]
        # ones row (index 0 of the pad block) + zero padding rows
        row = lax.broadcasted_iota(jnp.int32, (FP - F, br), 0)
        pad = jnp.where(row == 0, jnp.ones((), mm_dt), jnp.zeros((), mm_dt))
        for h in range(H):  # H is small & static; stores are tile-aligned
            ftaug_ref[h, :F, :] = y[:, h * F:(h + 1) * F].T.astype(mm_dt)
            ftaug_ref[h, F:, :] = pad
    return kernel


# ---------------------------------------------------------------------------
# Kernel B: flash-style tiled masked edge-softmax + aggregation (transposed:
# dst on lanes, src on sublanes), heads processed one at a time.
# ---------------------------------------------------------------------------
def _make_attn_kernel(H, F, ew_dt, mm_dt, approx_recip):
    def kernel(adjt_ref, ft_ref, el_ref, er_ref, out_ref, m_ref, acc_ref):
        # adjt_ref: (BS, BD) int8   adj_T[s, d] != 0 iff edge s -> d
        # ft_ref  : (H, FP, BS)     transposed src features + ones row (mm_dt)
        # el_ref  : (H, BS, 1) f32  source-side logit pieces
        # er_ref  : (H, 1, BD) f32  destination-side logit pieces
        # out_ref : (BD, H*F) f32   lane-dense output block
        # m_ref   : (H, 1, BD) f32  running max      (scratch)
        # acc_ref : (H, FP, BD) f32 accumulator; row F holds the denominator
        si = pl.program_id(1)

        @pl.when(si == 0)
        def _init():
            m_ref[...] = jnp.full(m_ref.shape, M_INIT, jnp.float32)
            acc_ref[...] = jnp.zeros(acc_ref.shape, jnp.float32)

        # Head-shared per-step precomputation: one compare/select pass total.
        edge = adjt_ref[...] != 0                                   # (BS, BD)
        bias = jnp.where(edge, jnp.zeros((), ew_dt),
                         jnp.full((), NEG_INF, ew_dt))              # additive mask
        pmask = edge.astype(mm_dt)                                  # exact-zero mask

        def head_body(h, carry):
            el_c = el_ref[h].astype(ew_dt)                          # (BS, 1)
            er_c = er_ref[h].astype(ew_dt)                          # (1, BD)
            e = el_c + er_c                                         # (BS, BD)
            e = jnp.where(e >= 0, e, e * NEG_SLOPE)                 # LeakyReLU
            e = e + bias                                            # off-edge -> ~-1e30

            m_prev = m_ref[h]                                       # (1, BD) f32
            m_new = jnp.maximum(
                m_prev, jnp.max(e, axis=0, keepdims=True).astype(jnp.float32))
            corr = jnp.exp(m_prev - m_new)                          # (1, BD) f32

            p = jnp.exp(e - m_new.astype(ew_dt))                    # (BS, BD) EUP
            p = p.astype(mm_dt) * pmask                             # exact zeros off-edge

            # rows 0..F-1: sum_s p*ft ; row F: sum_s p  (denominator via ones row)
            acc_ref[h] = acc_ref[h] * corr + jnp.dot(
                ft_ref[h], p, preferred_element_type=jnp.float32)   # (FP, BD)
            m_ref[h] = m_new
            return carry

        lax.fori_loop(0, H, head_body, 0)

        @pl.when(si == pl.num_programs(1) - 1)
        def _finalize():
            parts = []
            for h in range(H):
                num = acc_ref[h, :F, :]                             # (F, BD)
                den = acc_ref[h, F:F + 1, :]                        # (1, BD)
                inv = pl.reciprocal(jnp.where(den > 0.0, den, 1.0),
                                    approx=approx_recip)
                parts.append(num * inv)
            # single lane-dense (BD, H*F) store; one small transpose per dst tile
            out_ref[...] = jnp.concatenate(parts, axis=0).T.astype(out_ref.dtype)

    return kernel


def _vmem_limit_bytes():
    # Generation-aware VMEM budget (64 MiB scoped on v5e/v6e, 32 MiB on v7x).
    try:
        cap = int(pltpu.get_tpu_info().vmem_capacity_bytes)
    except Exception:
        cap = 128 << 20
    return min(cap // 2, 64 << 20)


def _pick_block(n, target):
    if n <= target:
        return n
    b = (target // 128) * 128
    while b >= 128:
        if n % b == 0:
            return b
        b -= 128
    return n


# ---------------------------------------------------------------------------
# Wrapper
# ---------------------------------------------------------------------------
def gat_conv_forward(x, adj, w_per_head, attn_l, attn_r, *,
                     compute_dtype=jnp.bfloat16, ewise_dtype=None,
                     block_rows=None, block_dst=None, block_src=None,
                     adj_is_transposed=False):
    """GATConv forward (module defaults: feat_drop=attn_drop=0, residual=False,
    activation=None).

    x          : (N, Din) f32 node features
    adj        : (N, N) adjacency mask; adj[i, j] != 0 iff edge j -> i
                 (pass adj_is_transposed=True if the array is already [src, dst])
    w_per_head : (H, Din, F) projection weights
    attn_l/_r  : (H, 1, F) attention vectors
    compute_dtype : MXU operand dtype (bf16 default; f32 for exact validation)
    ewise_dtype   : dtype of the elementwise/exp chain (defaults to compute_dtype;
                    pass jnp.float32 on v5e, which has no bf16 VALU/EUP)
    returns    : (N, H, F) f32
    """
    N, Din = x.shape
    H, _, F = w_per_head.shape
    HF = H * F
    FP = _round_up(F + 1, 8)          # feature rows + ones row, sublane aligned
    mm_dt = jnp.dtype(compute_dtype)
    ew_dt = jnp.dtype(ewise_dtype) if ewise_dtype is not None else mm_dt

    block_rows = _pick_block(N, 512) if block_rows is None else block_rows
    block_dst = _pick_block(N, 512) if block_dst is None else block_dst
    block_src = _pick_block(N, 512) if block_src is None else block_src
    for name, blk in (("block_rows", block_rows), ("block_dst", block_dst),
                      ("block_src", block_src)):
        assert N % blk == 0, f"{name}={blk} must divide N={N}"
        if blk != N:
            assert blk % 128 == 0, f"{name}={blk} must be a multiple of 128"

    # --- parameter repack (tiny, one-time, wrapper-side, exact f32) ---
    w32 = w_per_head.astype(jnp.float32)
    w_all = jnp.transpose(w32, (1, 0, 2)).reshape(Din, HF)            # (Din, H*F)
    al = attn_l.reshape(H, F).astype(jnp.float32)
    ar = attn_r.reshape(H, F).astype(jnp.float32)
    wl = jnp.sum(w32 * al[:, None, :], axis=-1).T                     # (Din, H)
    wr = jnp.sum(w32 * ar[:, None, :], axis=-1).T                     # (Din, H)
    w_fused = jnp.concatenate([w_all, wl, wr], axis=1).astype(mm_dt)  # (Din, HF+2H)

    vmem_limit = _vmem_limit_bytes()

    # --- Kernel A: fused projection + attention-logit pieces ---
    ft_aug, el, er = pl.pallas_call(
        _make_proj_kernel(H, F, FP, HF, mm_dt),
        out_shape=(jax.ShapeDtypeStruct((H, FP, N), mm_dt),
                   jax.ShapeDtypeStruct((N, H), jnp.float32),
                   jax.ShapeDtypeStruct((N, H), jnp.float32)),
        grid_spec=pltpu.PrefetchScalarGridSpec(
            num_scalar_prefetch=0,
            grid=(N // block_rows,),
            in_specs=[
                pl.BlockSpec((block_rows, Din), lambda i: (i, 0)),
                pl.BlockSpec((Din, HF + 2 * H), lambda i: (0, 0)),
            ],
            out_specs=[
                pl.BlockSpec((H, FP, block_rows), lambda i: (0, 0, i)),
                pl.BlockSpec((block_rows, H), lambda i: (i, 0)),
                pl.BlockSpec((block_rows, H), lambda i: (i, 0)),
            ]),
        compiler_params=pltpu.CompilerParams(
            dimension_semantics=("parallel",),
            vmem_limit_bytes=vmem_limit),
    )(x.astype(mm_dt), w_fused)

    # tiny relayouts (N*H*4 bytes each) for the attention kernel
    el_col = el.T.reshape(H, N, 1)            # source-side logits, src on sublanes
    er_row = er.T.reshape(H, 1, N)            # destination-side logits, dst on lanes

    adj_sd = adj if adj_is_transposed else adj.T     # adj_sd[src, dst]
    adj_i8 = (adj_sd != 0).astype(jnp.int8)          # int8: 4x less HBM than f32

    # --- Kernel B: flash-style tiled edge-softmax + aggregation ---
    attn_kernel = _make_attn_kernel(
        H, F, ew_dt, mm_dt,
        approx_recip=(mm_dt == jnp.dtype(jnp.bfloat16)))
    out_flat = pl.pallas_call(
        attn_kernel,
        out_shape=jax.ShapeDtypeStruct((N, HF), jnp.float32),
        grid_spec=pltpu.PrefetchScalarGridSpec(
            num_scalar_prefetch=0,
            grid=(N // block_dst, N // block_src),
            in_specs=[
                pl.BlockSpec((block_src, block_dst), lambda d, s: (s, d)),  # adj_T
                pl.BlockSpec((H, FP, block_src), lambda d, s: (0, 0, s)),   # ft_aug
                pl.BlockSpec((H, block_src, 1), lambda d, s: (0, s, 0)),    # el (src)
                pl.BlockSpec((H, 1, block_dst), lambda d, s: (0, 0, d)),    # er (dst)
            ],
            out_specs=pl.BlockSpec((block_dst, HF), lambda d, s: (d, 0)),
            scratch_shapes=[
                pltpu.VMEM((H, 1, block_dst), jnp.float32),    # running max
                pltpu.VMEM((H, FP, block_dst), jnp.float32),   # acc (+denominator)
            ]),
        compiler_params=pltpu.CompilerParams(
            dimension_semantics=("parallel", "arbitrary"),
            vmem_limit_bytes=vmem_limit),
    )(adj_i8, ft_aug, el_col, er_row)

    # (N, H*F) -> (N, H, F): free row-major reshape
    return out_flat.reshape(N, H, F)


# ---------------------------------------------------------------------------
# Pure-JAX reference (f32) for validation
# ---------------------------------------------------------------------------
def gat_conv_reference(x, adj, w_per_head, attn_l, attn_r):
    ft = jnp.einsum("nd,hdf->hnf", x, w_per_head)                 # (H, N, F)
    el = jnp.sum(ft * attn_l, axis=-1)                            # (H, N)
    er = jnp.sum(ft * attn_r, axis=-1)                            # (H, N)
    e = er[:, :, None] + el[:, None, :]                           # (H, N_dst, N_src)
    e = jnp.where(e >= 0, e, NEG_SLOPE * e)
    adj_f = (adj != 0).astype(jnp.float32)
    e = jnp.where(adj_f > 0, e, NEG_INF)
    m = jnp.max(e, axis=-1, keepdims=True)
    p = jnp.exp(e - m) * adj_f
    denom = jnp.sum(p, axis=-1, keepdims=True)
    denom = jnp.where(denom > 0, denom, 1.0)
    alpha = p / denom
    out = jnp.einsum("hij,hjf->hif", alpha, ft)                   # (H, N, F)
    return jnp.transpose(out, (1, 0, 2))                          # (N, H, F)


if __name__ == "__main__":
    def _run_case(N, Din, H, F, compute_dtype, ewise_dtype, block_dst, block_src,
                  rtol, atol, edge_prob, key, zero_first_row=False):
        kx, kw, kl, kr, ka = jax.random.split(key, 5)
        x = jax.random.normal(kx, (N, Din), dtype=jnp.float32)
        gain = float(np.sqrt(2.0))                       # calculate_gain('relu')
        std_w = gain * float(np.sqrt(2.0 / (Din + H * F)))
        w_per_head = std_w * jax.random.normal(kw, (H, Din, F), dtype=jnp.float32)
        std_a = gain * float(np.sqrt(2.0 / (H * F + F)))
        attn_l = std_a * jax.random.normal(kl, (H, 1, F), dtype=jnp.float32)
        attn_r = std_a * jax.random.normal(kr, (H, 1, F), dtype=jnp.float32)
        # random directed graph with self-loops: adj[i, j] = 1 iff edge j -> i
        adj = (jax.random.uniform(ka, (N, N)) < edge_prob).astype(jnp.int8)
        adj = jnp.maximum(adj, jnp.eye(N, dtype=jnp.int8))
        if zero_first_row:
            adj = adj.at[0, :].set(0)                    # isolated destination node

        out = gat_conv_forward(x, adj, w_per_head, attn_l, attn_r,
                               compute_dtype=compute_dtype,
                               ewise_dtype=ewise_dtype,
                               block_dst=block_dst, block_src=block_src)
        out = jax.block_until_ready(out)
        assert out.shape == (N, H, F)
        ref = gat_conv_reference(x, adj, w_per_head, attn_l, attn_r)
        np.testing.assert_allclose(np.asarray(out, dtype=np.float32),
                                   np.asarray(ref), rtol=rtol, atol=atol)

    root = jax.random.PRNGKey(0)
    k1, k2, k3 = jax.random.split(root, 3)

    # 1) Module-scale shapes, exact f32 path, single-tile grid; exercises the
    #    isolated-node (no in-edges -> zero output) behavior.
    _run_case(16, 16, 4, 32, jnp.float32, None, None, None,
              2e-4, 2e-4, 0.3, k1, zero_first_row=True)

    # 2) Multi-tile flash-style grid (2 dst x 2 src tiles), exact f32 path.
    _run_case(512, 32, 4, 32, jnp.float32, None, 256, 256,
              2e-4, 2e-4, 0.05, k2)

    # 3) Same tiled grid on the bf16 fast path (bf16 MXU operands + bf16
    #    elementwise/exp chain; f32 running max / accumulator / denominator).
    _run_case(512, 32, 4, 32, jnp.bfloat16, None, 256, 256,
              1e-1, 1e-1, 0.05, k3)

    # TODO(synk): feat_drop / attn_drop are no-ops at the default rate 0.0;
    # residual=False and activation=None (module defaults) are not emitted.
    print("KERNEL_OK")
</pallas_src>

<mosaic_0001>
module attributes {stable_mosaic.version = 11 : i64} {
  func.func @kernel(%arg0: i32, %arg1: memref<16x16xf32, #tpu.memory_space<vmem>>, %arg2: memref<16x136xf32, #tpu.memory_space<vmem>>, %arg3: memref<4x40x16xf32, #tpu.memory_space<vmem>>, %arg4: memref<16x4xf32, #tpu.memory_space<vmem>>, %arg5: memref<16x4xf32, #tpu.memory_space<vmem>>) attributes {dimension_semantics = [#tpu.dimension_semantics<parallel>], iteration_bounds = array<i64: 1>, scalar_prefetch = 0 : i64, scratch_operands = 0 : i64, tpu.core_type = #tpu.core_type<tc>, window_params = [{transform_indices = @transform_0, window_bounds = array<i64: 16, 16>}, {pipeline_mode = #tpu.pipeline_mode<synchronous>, transform_indices = @transform_1, window_bounds = array<i64: 16, 136>}, {transform_indices = @transform_2, window_bounds = array<i64: 4, 40, 16>}, {transform_indices = @transform_3, window_bounds = array<i64: 16, 4>}, {transform_indices = @transform_4, window_bounds = array<i64: 16, 4>}]} {
    %c0 = arith.constant 0 : index
    %c0_0 = arith.constant 0 : index
    %0 = vector.load %arg1[%c0, %c0_0] : memref<16x16xf32, #tpu.memory_space<vmem>>, vector<16x16xf32>
    %c0_1 = arith.constant 0 : index
    %c0_2 = arith.constant 0 : index
    %1 = vector.load %arg2[%c0_1, %c0_2] : memref<16x136xf32, #tpu.memory_space<vmem>>, vector<16x136xf32>
    %cst = arith.constant dense<0.000000e+00> : vector<16x136xf32>
    %2 = tpu.matmul %0, %1, %cst {dimension_numbers = #tpu.dot_dimension_numbers<[1], [0], [0], [1], [0, 0, 1, 1], [], []>} : vector<16x16xf32>, vector<16x136xf32>, vector<16x136xf32> -> vector<16x136xf32>
    %3 = vector.extract_strided_slice %2 {offsets = [0, 128], sizes = [16, 4], strides = [1, 1]} : vector<16x136xf32> to vector<16x4xf32>
    %c0_3 = arith.constant 0 : index
    %c0_4 = arith.constant 0 : index
    %4 = vector.load %arg4[%c0_3, %c0_4] : memref<16x4xf32, #tpu.memory_space<vmem>>, vector<16x4xf32>
    tpu.vector_store %arg4[%c0_3, %c0_4], %3 {strides = array<i32>} : memref<16x4xf32, #tpu.memory_space<vmem>>, vector<16x4xf32>,
    %5 = vector.extract_strided_slice %2 {offsets = [0, 132], sizes = [16, 4], strides = [1, 1]} : vector<16x136xf32> to vector<16x4xf32>
    %c0_5 = arith.constant 0 : index
    %c0_6 = arith.constant 0 : index
    %6 = vector.load %arg5[%c0_5, %c0_6] : memref<16x4xf32, #tpu.memory_space<vmem>>, vector<16x4xf32>
    tpu.vector_store %arg5[%c0_5, %c0_6], %5 {strides = array<i32>} : memref<16x4xf32, #tpu.memory_space<vmem>>, vector<16x4xf32>,
    %7 = tpu.iota {dimensions = array<i32: 0>} : vector<8x16xi32>
    %c0_i32 = arith.constant 0 : i32
    %8 = vector.broadcast %c0_i32 : i32 to vector<8x16xi32>
    %9 = arith.cmpi eq, %7, %8 : vector<8x16xi32>
    %cst_7 = arith.constant 1.000000e+00 : f32
    %cst_8 = arith.constant 0.000000e+00 : f32
    %10 = vector.broadcast %cst_7 : f32 to vector<8x16xf32>
    %11 = vector.broadcast %cst_8 : f32 to vector<8x16xf32>
    %12 = arith.select %9, %10, %11 : vector<8x16xi1>, vector<8x16xf32>
    %13 = vector.extract_strided_slice %2 {offsets = [0, 0], sizes = [16, 32], strides = [1, 1]} : vector<16x136xf32> to vector<16x32xf32>
    %14 = tpu.transpose %13, [1, 0] : vector<16x32xf32> -> vector<32x16xf32>
    %c0_9 = arith.constant 0 : index
    %c0_10 = arith.constant 0 : index
    %c0_11 = arith.constant 0 : index
    %15 = vector.load %arg3[%c0_9, %c0_10, %c0_11] : memref<4x40x16xf32, #tpu.memory_space<vmem>>, vector<1x32x16xf32>
    %16 = vector.shape_cast %15 : vector<1x32x16xf32> to vector<32x16xf32>
    %17 = vector.shape_cast %14 : vector<32x16xf32> to vector<1x32x16xf32>
    tpu.vector_store %arg3[%c0_9, %c0_10, %c0_11], %17 {strides = array<i32>} : memref<4x40x16xf32, #tpu.memory_space<vmem>>, vector<1x32x16xf32>,
    %c0_12 = arith.constant 0 : index
    %c32 = arith.constant 32 : index
    %c0_13 = arith.constant 0 : index
    %18 = vector.load %arg3[%c0_12, %c32, %c0_13] : memref<4x40x16xf32, #tpu.memory_space<vmem>>, vector<1x8x16xf32>
    %19 = vector.shape_cast %18 : vector<1x8x16xf32> to vector<8x16xf32>
    %20 = vector.shape_cast %12 : vector<8x16xf32> to vector<1x8x16xf32>
    tpu.vector_store %arg3[%c0_12, %c32, %c0_13], %20 {strides = array<i32>} : memref<4x40x16xf32, #tpu.memory_space<vmem>>, vector<1x8x16xf32>,
    %21 = vector.extract_strided_slice %2 {offsets = [0, 32], sizes = [16, 32], strides = [1, 1]} : vector<16x136xf32> to vector<16x32xf32>
    %22 = tpu.transpose %21, [1, 0] : vector<16x32xf32> -> vector<32x16xf32>
    %c1 = arith.constant 1 : index
    %c0_14 = arith.constant 0 : index
    %c0_15 = arith.constant 0 : index
    %23 = vector.load %arg3[%c1, %c0_14, %c0_15] : memref<4x40x16xf32, #tpu.memory_space<vmem>>, vector<1x32x16xf32>
    %24 = vector.shape_cast %23 : vector<1x32x16xf32> to vector<32x16xf32>
    %25 = vector.shape_cast %22 : vector<32x16xf32> to vector<1x32x16xf32>
    tpu.vector_store %arg3[%c1, %c0_14, %c0_15], %25 {strides = array<i32>} : memref<4x40x16xf32, #tpu.memory_space<vmem>>, vector<1x32x16xf32>,
    %c1_16 = arith.constant 1 : index
    %c32_17 = arith.constant 32 : index
    %c0_18 = arith.constant 0 : index
    %26 = vector.load %arg3[%c1_16, %c32_17, %c0_18] : memref<4x40x16xf32, #tpu.memory_space<vmem>>, vector<1x8x16xf32>
    %27 = vector.shape_cast %26 : vector<1x8x16xf32> to vector<8x16xf32>
    %28 = vector.shape_cast %12 : vector<8x16xf32> to vector<1x8x16xf32>
    tpu.vector_store %arg3[%c1_16, %c32_17, %c0_18], %28 {strides = array<i32>} : memref<4x40x16xf32, #tpu.memory_space<vmem>>, vector<1x8x16xf32>,
    %29 = vector.extract_strided_slice %2 {offsets = [0, 64], sizes = [16, 32], strides = [1, 1]} : vector<16x136xf32> to vector<16x32xf32>
    %30 = tpu.transpose %29, [1, 0] : vector<16x32xf32> -> vector<32x16xf32>
    %c2 = arith.constant 2 : index
    %c0_19 = arith.constant 0 : index
    %c0_20 = arith.constant 0 : index
    %31 = vector.load %arg3[%c2, %c0_19, %c0_20] : memref<4x40x16xf32, #tpu.memory_space<vmem>>, vector<1x32x16xf32>
    %32 = vector.shape_cast %31 : vector<1x32x16xf32> to vector<32x16xf32>
    %33 = vector.shape_cast %30 : vector<32x16xf32> to vector<1x32x16xf32>
    tpu.vector_store %arg3[%c2, %c0_19, %c0_20], %33 {strides = array<i32>} : memref<4x40x16xf32, #tpu.memory_space<vmem>>, vector<1x32x16xf32>,
    %c2_21 = arith.constant 2 : index
    %c32_22 = arith.constant 32 : index
    %c0_23 = arith.constant 0 : index
    %34 = vector.load %arg3[%c2_21, %c32_22, %c0_23] : memref<4x40x16xf32, #tpu.memory_space<vmem>>, vector<1x8x16xf32>
    %35 = vector.shape_cast %34 : vector<1x8x16xf32> to vector<8x16xf32>
    %36 = vector.shape_cast %12 : vector<8x16xf32> to vector<1x8x16xf32>
    tpu.vector_store %arg3[%c2_21, %c32_22, %c0_23], %36 {strides = array<i32>} : memref<4x40x16xf32, #tpu.memory_space<vmem>>, vector<1x8x16xf32>,
    %37 = vector.extract_strided_slice %2 {offsets = [0, 96], sizes = [16, 32], strides = [1, 1]} : vector<16x136xf32> to vector<16x32xf32>
    %38 = tpu.transpose %37, [1, 0] : vector<16x32xf32> -> vector<32x16xf32>
    %c3 = arith.constant 3 : index
    %c0_24 = arith.constant 0 : index
    %c0_25 = arith.constant 0 : index
    %39 = vector.load %arg3[%c3, %c0_24, %c0_25] : memref<4x40x16xf32, #tpu.memory_space<vmem>>, vector<1x32x16xf32>
    %40 = vector.shape_cast %39 : vector<1x32x16xf32> to vector<32x16xf32>
    %41 = vector.shape_cast %38 : vector<32x16xf32> to vector<1x32x16xf32>
    tpu.vector_store %arg3[%c3, %c0_24, %c0_25], %41 {strides = array<i32>} : memref<4x40x16xf32, #tpu.memory_space<vmem>>, vector<1x32x16xf32>,
    %c3_26 = arith.constant 3 : index
    %c32_27 = arith.constant 32 : index
    %c0_28 = arith.constant 0 : index
    %42 = vector.load %arg3[%c3_26, %c32_27, %c0_28] : memref<4x40x16xf32, #tpu.memory_space<vmem>>, vector<1x8x16xf32>
    %43 = vector.shape_cast %42 : vector<1x8x16xf32> to vector<8x16xf32>
    %44 = vector.shape_cast %12 : vector<8x16xf32> to vector<1x8x16xf32>
    tpu.vector_store %arg3[%c3_26, %c32_27, %c0_28], %44 {strides = array<i32>} : memref<4x40x16xf32, #tpu.memory_space<vmem>>, vector<1x8x16xf32>,
    return
  }
  func.func @transform_0(%arg0: i32) -> (i32, i32) {
    %c0_i32 = arith.constant 0 : i32
    %c0_i32_0 = arith.constant 0 : i32
    return %arg0, %c0_i32 : i32, i32
  }
  func.func @transform_1(%arg0: i32) -> (i32, i32) {
    %c0_i32 = arith.constant 0 : i32
    %c0_i32_0 = arith.constant 0 : i32
    %c0_i32_1 = arith.constant 0 : i32
    return %c0_i32, %c0_i32_0 : i32, i32
  }
  func.func @transform_2(%arg0: i32) -> (i32, i32, i32) {
    %c0_i32 = arith.constant 0 : i32
    %c0_i32_0 = arith.constant 0 : i32
    %c0_i32_1 = arith.constant 0 : i32
    return %c0_i32, %c0_i32_0, %arg0 : i32, i32, i32
  }
  func.func @transform_3(%arg0: i32) -> (i32, i32) {
    %c0_i32 = arith.constant 0 : i32
    %c0_i32_0 = arith.constant 0 : i32
    return %arg0, %c0_i32 : i32, i32
  }
  func.func @transform_4(%arg0: i32) -> (i32, i32) {
    %c0_i32 = arith.constant 0 : i32
    %c0_i32_0 = arith.constant 0 : i32
    return %arg0, %c0_i32 : i32, i32
  }
}

</mosaic_0001>

<bundles_post_ra>
// kernel: tpu_custom_call.1
= control target key start
LH: loop header
LB: loop body
LE: loop exit
PB: predicated region body
PF: predicated region fallthrough
CT: control target
= control target key end

     0   :  { %10 = vsyncpa [#allocation3], 0  ;;  %s550_s0 = inlined_call_operand.hbm [shape: f32[16,16], index: 0, kind: input, shape index: {}]   ;;  %s551_s1 = inlined_call_operand.hbm [shape: f32[16,136], index: 1, kind: input, shape index: {}]   ;;  %s552_s2 = inlined_call_operand.vmem [shape: f32[4,40,16], index: 2, kind: output, shape index: {0}]   ;;  %s553_s3 = inlined_call_operand.vmem [shape: f32[16,4], index: 3, kind: output, shape index: {1}]   ;;  %s554_s4 = inlined_call_operand.vmem [shape: f32[16,4], index: 4, kind: output, shape index: {2}]  }
   0x1   :  { %11 = vsyncpa [#allocation5], 0  ;;  %s410_s15 = smov [#allocation2]  }
   0x2   :  { %s17_s16 = sshll.u32 %s410_s15, 4  ;;  %s18_s16 = int_to_ptr.vmem [resolvable:$true] %s17_s16 }
   0x3   :  { %s374_s17 = scalar_lea.vmem %s18_s16, 256  ;;  %p379_p1 = scmp.lt.s32.totalorder %s18_s16, %s18_s16 }
   0x4   :  { %p375_p0 = scmp.ne.s32.totalorder %s18_s16, %s374_s17  ;;  %p380_p2 = scmp.lt.s32.totalorder %s374_s17, %s374_s17 }
   0x6   :  { %p381_p3 = por %p380_p2, %p379_p1 }
   0x8   :  { %p382_p4 = pnand %p381_p3, %p375_p0 }
   0xa   :  { %385 = shalt.err (!%p382_p4)
}
   0xb   :  { %s411_s18 = smov 128   ;;  %s412_s19 = smov 8  }
   0xc   :  { %23 = dma.hbm_to_vmem [thread:$0]  %s550_s0, 256, %s18_s16, [#allocation3], %s411_s18, %s411_s18, %s412_s19  }
   0xd   :  { %s413_s22 = smov [#allocation4]  }
   0xe   :  { %s29_s23 = sshll.u32 %s413_s22, 4  ;;  %s30_s23 = int_to_ptr.vmem [resolvable:$true] %s29_s23 }
   0xf   :  { %s394_s24 = scalar_lea.vmem %s30_s23, 512  ;;  %p399_p6 = scmp.lt.s32.totalorder %s30_s23, %s30_s23 }
  0x10   :  { %p395_p5 = scmp.ne.s32.totalorder %s30_s23, %s394_s24  ;;  %p400_p7 = scmp.lt.s32.totalorder %s394_s24, %s394_s24 }
  0x12   :  { %p401_p8 = por %p400_p7, %p399_p6 }
  0x14   :  { %p402_p9 = pnand %p401_p8, %p395_p5 }
  0x16   :  { %405 = shalt.err (!%p402_p9)
}
  0x17   :  { %s414_s25 = smov 256   ;;  %s415_s26 = smov 16  }
  0x18   :  { %35 = dma.hbm_to_vmem [thread:$0]  %s551_s1, 512, %s30_s23, [#allocation5], %s414_s25, %s414_s25, %s415_s26  }
  0x19   :  { %406 = dma.done.wait [#allocation3], 256  }
  0x1a   :  { %407 = vsyncadd [#allocation3], 4294967040 }
  0x1b   :  { %408 = dma.done.wait [#allocation5], 512  }
  0x1c   :  { %409 = vsyncadd [#allocation5], 4294966784  ;;  %v145_v0 = vlaneseq  ;;  %v416_v1 = vmov 0.0   ;;  %vm48_vm1 = vcmask 130048   ;;  %v47_v4 = vld [vmem:[#allocation4 + $0x18] sm:$0xff]  ;;  %v46_v5 = vld [vmem:[#allocation4 + $0x10] sm:$0xff] }
  0x1d   :  { %119 = vmatprep.mubr.f32.mxu0 %v416_v1  ;;  %125 = vmatprep.mubr.f32.mxu1 %v416_v1  ;;  %v45_v6 = vld [vmem:[#allocation4 + $0x8] sm:$0xff]  ;;  %v44_v7 = vld [vmem:[#allocation4] sm:$0xff]  ;;  %v42_v8 = vld [vmem:[#allocation2] sm:$0xff]  ;;  %vm132_vm2 = vcmask 31744   ;;  %s417_s9 = smov 96   ;;  %s418_s14 = smov 32  }
  0x1e   :  { %v146_v2 = vshrl.u32 %v145_v0, 7  ;;  %83 = vmatprep.subr.mxu0 %v47_v4  ;;  %351 = vmatprep.subr.mxu1 %v47_v4  ;;  %v43_v9 = vld [vmem:[#allocation2 + $0x8] sm:$0xff]  ;;  %s419_s15 = smov 64   ;;  %s420_s16 = smov 124  }
  0x1f   :  { %84 = vmatpush1.msra.mxu0 %v46_v5  ;;  %353 = vmatpush1.msra.mxu1 %v46_v5 }
  0x20   :  { %vm147_vm0 = vcmp.eq.s32.totalorder %v146_v2, 0  ;;  %85 = vmatprep.subr.mxu0 %v45_v6  ;;  %352 = vmatprep.subr.mxu1 %v45_v6 }
  0x21   :  { %v148_v3 = vsel %vm147_vm0, 1.0, %v416_v1  ;;  %86 = vmatpush1.msra.mxu0 %v44_v7  ;;  %354 = vmatpush1.msra.mxu1 %v44_v7 }
  0x22   :  { %185 = vst.msk [vmem:[%s552_s2 + $0x20] sm:$0xff] %vm48_vm1, %v148_v3  ;;  %340 = vst.msk [vmem:[%s552_s2 + $0x48] sm:$0xff] %vm48_vm1, %v148_v3  ;;  %334 = vmatmul.mubr.msk.f32.vlgmr.msra.gmra.mxu0 %vm48_vm1, %v42_v8  ;;  %335 = vmatmul.mubr.msk.f32.vlgmr.msra.gmra.mxu1 %vm48_vm1, %v43_v9 }
  0x23   :  { %345 = vst.msk [vmem:[%s552_s2 + $0x70] sm:$0xff] %vm48_vm1, %v148_v3  ;;  %350 = vst.msk [vmem:[%s552_s2 + $0x98] sm:$0xff] %vm48_vm1, %v148_v3 }
  0xe2   :  { %v121_v10 = vpop.f32.mrf.mxu0  ;;  %v127_v11 = vpop.f32.mrf.mxu1 }
  0xe3   :  { %190 = vrot.lane.b32.xlu1 %v127_v11, %s417_s9  ;;  %188 = vrot.lane.b32.xlu0 %v121_v10, %s417_s9 }
  0xe4   :  { %v123_v12 = vpop.f32.mrf.mxu0  ;;  %v129_v13 = vpop.f32.mrf.mxu1 }
  0xe5   :  { %133 = vst.msk [vmem:[%s553_s3] sm:$0xff] %vm132_vm2, %v123_v12  ;;  %134 = vst.msk [vmem:[%s553_s3 + $0x8] sm:$0xff] %vm132_vm2, %v129_v13 }
  0xe7   :  { %276 = vrot.lane.b32.xlu1 %v121_v10, %s418_s14  ;;  %232 = vrot.lane.b32.xlu0 %v121_v10, %s419_s15 }
  0xeb   :  { %234 = vrot.lane.b32.xlu1 %v127_v11, %s419_s15  ;;  %137 = vrot.lane.b32.xlu0 %v123_v12, %s420_s16 }
  0xef   :  { %278 = vrot.lane.b32.xlu1 %v127_v11, %s418_s14  ;;  %139 = vrot.lane.b32.xlu0 %v129_v13, %s420_s16 }
 0x118   :  { %149 = vxpose.xlu1.b32.start [1/2] (short) (narrow) %v121_v10, 32 }
 0x11c   :  { %150 = vxpose.xlu1.b32.end [2/2] (short) (narrow) %v127_v11, 32 }
 0x155   :  { %v191_v14 = vpop.permute.xlu1 %190  ;;  %v189_v15 = vpop.permute.xlu0 %188 }
 0x156   :  { %194 = vxpose.xlu0.b32.start [1/2] (short) (narrow) %v189_v15, 32 }
 0x159   :  { %v277_v16 = vpop.permute.xlu1 %276  ;;  %v233_v17 = vpop.permute.xlu0 %232 }
 0x15a   :  { %238 = vxpose.xlu1.b32.start [1/2] (short) (narrow) %v233_v17, 32  ;;  %195 = vxpose.xlu0.b32.end [2/2] (short) (narrow) %v191_v14, 32 }
 0x15d   :  { %v235_v18 = vpop.permute.xlu1 %234  ;;  %v138_v19 = vpop.permute.xlu0 %137 }
 0x15e   :  { %143 = vst.msk [vmem:[%s554_s4] sm:$0xff] %vm132_vm2, %v138_v19  ;;  %239 = vxpose.xlu1.b32.end [2/2] (short) (narrow) %v235_v18, 32 }
 0x161   :  { %v140_v20 = vpop.permute.xlu0 %139  ;;  %v279_v21 = vpop.permute.xlu1 %278 }
 0x162   :  { %144 = vst.msk [vmem:[%s554_s4 + $0x8] sm:$0xff] %vm132_vm2, %v140_v20 }
 0x163   :  { %282 = vxpose.xlu0.b32.start [1/2] (short) (narrow) %v277_v16, 32 }
 0x167   :  { %283 = vxpose.xlu0.b32.end [2/2] (short) (narrow) %v279_v21, 32 }
 0x194   :  { %v165_v22 = vpop.trf.xlu1 }
 0x195   :  { %181 = vst.msk [vmem:[%s552_s2] sm:$0xff] %vm48_vm1, %v165_v22 }
 0x198   :  { %v166_v23 = vpop.trf.xlu1 }
 0x199   :  { %182 = vst.msk [vmem:[%s552_s2 + $0x8] sm:$0xff] %vm48_vm1, %v166_v23 }
 0x19c   :  { %v167_v24 = vpop.trf.xlu1 }
 0x19d   :  { %183 = vst.msk [vmem:[%s552_s2 + $0x10] sm:$0xff] %vm48_vm1, %v167_v24 }
 0x1a0   :  { %v168_v25 = vpop.trf.xlu1 }
 0x1a1   :  { %184 = vst.msk [vmem:[%s552_s2 + $0x18] sm:$0xff] %vm48_vm1, %v168_v25 }
 0x1d2   :  { %v210_v26 = vpop.trf.xlu0 }
 0x1d3   :  { %336 = vst.msk [vmem:[%s552_s2 + $0x28] sm:$0xff] %vm48_vm1, %v210_v26 }
 0x1d6   :  { %v211_v27 = vpop.trf.xlu0  ;;  %v254_v28 = vpop.trf.xlu1 }
 0x1d7   :  { %337 = vst.msk [vmem:[%s552_s2 + $0x30] sm:$0xff] %vm48_vm1, %v211_v27  ;;  %341 = vst.msk [vmem:[%s552_s2 + $0x50] sm:$0xff] %vm48_vm1, %v254_v28 }
 0x1da   :  { %v212_v29 = vpop.trf.xlu0  ;;  %v255_v30 = vpop.trf.xlu1 }
 0x1db   :  { %338 = vst.msk [vmem:[%s552_s2 + $0x38] sm:$0xff] %vm48_vm1, %v212_v29  ;;  %342 = vst.msk [vmem:[%s552_s2 + $0x58] sm:$0xff] %vm48_vm1, %v255_v30 }
 0x1de   :  { %v213_v31 = vpop.trf.xlu0  ;;  %v256_v32 = vpop.trf.xlu1 }
 0x1df   :  { %339 = vst.msk [vmem:[%s552_s2 + $0x40] sm:$0xff] %vm48_vm1, %v213_v31  ;;  %343 = vst.msk [vmem:[%s552_s2 + $0x60] sm:$0xff] %vm48_vm1, %v256_v32 }
 0x1e2   :  { %v298_v33 = vpop.trf.xlu0  ;;  %v257_v34 = vpop.trf.xlu1 }
 0x1e3   :  { %346 = vst.msk [vmem:[%s552_s2 + $0x78] sm:$0xff] %vm48_vm1, %v298_v33  ;;  %344 = vst.msk [vmem:[%s552_s2 + $0x68] sm:$0xff] %vm48_vm1, %v257_v34 }
 0x1e6   :  { %v299_v35 = vpop.trf.xlu0 }
 0x1e7   :  { %347 = vst.msk [vmem:[%s552_s2 + $0x80] sm:$0xff] %vm48_vm1, %v299_v35 }
 0x1ea   :  { %v300_v36 = vpop.trf.xlu0 }
 0x1eb   :  { %348 = vst.msk [vmem:[%s552_s2 + $0x88] sm:$0xff] %vm48_vm1, %v300_v36 }
 0x1ee   :  { %v301_v37 = vpop.trf.xlu0 }
 0x1ef   :  { %349 = vst.msk [vmem:[%s552_s2 + $0x90] sm:$0xff] %vm48_vm1, %v301_v37 }
 0x1f0   :  { %332 = vsyncpa [#allocation3], 1 }
 0x1f1   :  { %333 = vsyncpa [#allocation5], 1 }

</bundles_post_ra>
